<compile_context>
chip_gen: v6e
topology: v6e:2x2x1
jax: 0.10.0
libtpu: 0.0.40
codegen_flags: <defaults>
</compile_context>

<pallas_src>
import jax
import jax.numpy as jnp
from jax.experimental import pallas as pl
from jax.experimental.pallas import tpu as pltpu  # noqa: F401  (TPU backend assumed)

# ---- problem sizes (small, consistent with the module) ----
B = 2                     # batch
T = 16                    # time steps
C_IN = 5                  # input_dim (features per step)
E = 32                    # embed_dim (kept small; module default is 256)
K1, S1 = 4, 2             # conv1 kernel / stride
K2, S2 = 3, 2             # conv2 kernel / stride
L1 = (T - K1) // S1 + 1   # 7  : conv1 output length
L2 = (L1 - K2) // S2 + 1  # 3  : conv2 output length
U_ROWS = S2 * (L2 - 1) + 1  # 5: contiguous window that covers all strided taps
HID = E // 2              # 16 : MLP hidden
N_CLS = 100               # classifier outputs
N_PAD = 128               # lane-dense padded classifier width
BN_EPS = 1e-5             # torch.nn.BatchNorm1d default


# ----------------------------- Pallas kernel -----------------------------
def sohcnn_kernel(p_ref, w1_ref, s1_ref, w2_ref, s2_ref,
                  w3_ref, b3_ref, w4_ref, b4_ref, o_ref):
    # Hoist all parameter loads once (no re-indexing inside loops).
    patches = p_ref[...]                    # [B*L1, K1*C_IN]
    w1 = w1_ref[...]                        # [K1*C_IN, E]  (BN1 folded)
    sh1 = s1_ref[...]                       # [1, E]
    w2_taps = [w2_ref[k] for k in range(K2)]  # K2 x [E, E]  (BN2 folded)
    sh2 = s2_ref[...]                       # [1, E]
    w3 = w3_ref[...]                        # [E, HID]
    b3 = b3_ref[...]                        # [1, HID]
    w4 = w4_ref[...]                        # [HID, N_PAD] (zero padded)
    b4 = b4_ref[...]                        # [1, N_PAD]

    # conv1 + (folded) BN1 + ReLU — one matmul, batch stacked on rows.
    y1 = jnp.maximum(
        jnp.dot(patches, w1, preferred_element_type=jnp.float32) + sh1, 0.0)  # [B*L1, E]

    inv_l2 = 1.0 / L2
    pooled_rows = []
    for b in range(B):                      # B=2, static unroll
        base = b * L1
        # conv2 as a sum over taps of contiguous row windows of y1.
        # u[r] = sum_k y1[base + r + k] @ W2_k  → rows r = 0,2,4 are the L2 valid outputs.
        u = jnp.dot(y1[base:base + U_ROWS, :], w2_taps[0],
                    preferred_element_type=jnp.float32)
        for k in range(1, K2):
            u = u + jnp.dot(y1[base + k:base + k + U_ROWS, :], w2_taps[k],
                            preferred_element_type=jnp.float32)
        # (folded) BN2 + ReLU on the valid rows, then AdaptiveAvgPool1d(1).
        acc = jnp.maximum(u[0:1, :] + sh2, 0.0)
        for t in range(1, L2):
            acc = acc + jnp.maximum(u[S2 * t:S2 * t + 1, :] + sh2, 0.0)
        pooled_rows.append(acc * inv_l2)    # [1, E]
    pooled = jnp.concatenate(pooled_rows, axis=0)            # [B, E]

    # MLP head: Linear -> ReLU -> Linear (padded to 128 lanes).
    h = jnp.maximum(
        jnp.dot(pooled, w3, preferred_element_type=jnp.float32) + b3, 0.0)    # [B, HID]
    o_ref[...] = jnp.dot(h, w4, preferred_element_type=jnp.float32) + b4      # [B, N_PAD]


# ----------------------------- wrapper -----------------------------------
def sohcnn_forward(x, kparams):
    """x: [B, T, C_IN] (batch, time_steps, features) — module permutes to NCW internally."""
    (w1_eff, shift1, w2_eff, shift2, w3, b3, w4, b4) = kparams
    # im2col for conv1 (wrapper-side layout plumbing). Row = (batch, out position),
    # column = kernel-tap-major flattening (k*C_IN + c) to match w1_eff.
    cols = [x[:, k:k + S1 * L1:S1, :] for k in range(K1)]
    patches = jnp.concatenate(cols, axis=-1).reshape(B * L1, K1 * C_IN)

    out_pad = pl.pallas_call(
        sohcnn_kernel,
        out_shape=jax.ShapeDtypeStruct((B, N_PAD), jnp.float32),
    )(patches, w1_eff, shift1, w2_eff, shift2, w3, b3, w4, b4)
    return out_pad[:, :N_CLS]


# ------------------ parameter prep (BN folding, transposes) ---------------
def prepare_kernel_params(tp):
    # conv1 + BN1 (eval) folded:  relu((im2col @ W1_eff) + shift1)
    scale1 = tp["g1"] / jnp.sqrt(tp["rv1"] + BN_EPS)
    shift1 = ((tp["b1"] - tp["rm1"]) * scale1 + tp["be1"])[None, :]
    w1_eff = (jnp.transpose(tp["W1"], (2, 1, 0)).reshape(K1 * C_IN, E)
              * scale1[None, :])
    # conv2 + BN2 (eval) folded.
    scale2 = tp["g2"] / jnp.sqrt(tp["rv2"] + BN_EPS)
    shift2 = ((tp["b2"] - tp["rm2"]) * scale2 + tp["be2"])[None, :]
    w2_eff = jnp.transpose(tp["W2"], (2, 1, 0)) * scale2[None, None, :]   # [K2, E, E]
    # MLP head: store weights as [in, out] so the kernel does x @ W + b.
    w3 = tp["W3"].T                                   # [E, HID]
    b3 = tp["b3"][None, :]
    # zero-pad the classifier to 128 output lanes for an unmasked (lane-dense) store.
    w4 = jnp.zeros((HID, N_PAD), jnp.float32).at[:, :N_CLS].set(tp["W4"].T)
    b4 = jnp.zeros((1, N_PAD), jnp.float32).at[:, :N_CLS].set(tp["b4"][None, :])
    return (w1_eff, shift1, w2_eff, shift2, w3, b3, w4, b4)


# ---------------- pure-JAX reference (unfused, independent path) ----------
def reference_sohcnn(x, tp):
    xc = jnp.transpose(x, (0, 2, 1))                  # x.permute(0, 2, 1) -> (B, C_IN, T)

    def conv1d(v, w, b, stride):
        y = jax.lax.conv_general_dilated(
            v, w, window_strides=(stride,), padding="VALID",
            dimension_numbers=("NCH", "OIH", "NCH"))
        return y + b[None, :, None]

    def bn(v, g, be, rm, rv):
        return ((v - rm[None, :, None]) / jnp.sqrt(rv[None, :, None] + BN_EPS)
                * g[None, :, None] + be[None, :, None])

    y = jax.nn.relu(bn(conv1d(xc, tp["W1"], tp["b1"], S1),
                       tp["g1"], tp["be1"], tp["rm1"], tp["rv1"]))
    y = jax.nn.relu(bn(conv1d(y, tp["W2"], tp["b2"], S2),
                       tp["g2"], tp["be2"], tp["rm2"], tp["rv2"]))
    pooled = jnp.mean(y, axis=-1)                     # AdaptiveAvgPool1d(1).squeeze(-1)
    h = jax.nn.relu(pooled @ tp["W3"].T + tp["b3"])
    return h @ tp["W4"].T + tp["b4"]


def init_torch_params(key):
    ks = jax.random.split(key, 16)
    n = jax.random.normal
    return dict(
        W1=0.1 * n(ks[0], (E, C_IN, K1), jnp.float32),
        b1=0.05 * n(ks[1], (E,), jnp.float32),
        g1=1.0 + 0.1 * n(ks[2], (E,), jnp.float32),
        be1=0.1 * n(ks[3], (E,), jnp.float32),
        rm1=0.1 * n(ks[4], (E,), jnp.float32),
        rv1=0.5 + jax.random.uniform(ks[5], (E,), jnp.float32),
        W2=0.1 * n(ks[6], (E, E, K2), jnp.float32),
        b2=0.05 * n(ks[7], (E,), jnp.float32),
        g2=1.0 + 0.1 * n(ks[8], (E,), jnp.float32),
        be2=0.1 * n(ks[9], (E,), jnp.float32),
        rm2=0.1 * n(ks[10], (E,), jnp.float32),
        rv2=0.5 + jax.random.uniform(ks[11], (E,), jnp.float32),
        W3=0.1 * n(ks[12], (HID, E), jnp.float32),
        b3=0.05 * n(ks[13], (HID,), jnp.float32),
        W4=0.1 * n(ks[14], (N_CLS, HID), jnp.float32),
        b4=0.05 * n(ks[15], (N_CLS,), jnp.float32),
    )


if __name__ == "__main__":
    key = jax.random.PRNGKey(0)
    k_x, k_p = jax.random.split(key)
    x = jax.random.normal(k_x, (B, T, C_IN), jnp.float32)   # (batch, time_steps, input_dim)
    tp = init_torch_params(k_p)
    kparams = prepare_kernel_params(tp)

    out = jax.block_until_ready(jax.jit(sohcnn_forward)(x, kparams))
    ref = jax.block_until_ready(reference_sohcnn(x, tp))

    assert out.shape == (B, N_CLS)
    err = float(jnp.max(jnp.abs(out - ref)))
    assert jnp.allclose(out, ref, atol=1e-3, rtol=1e-3), f"mismatch vs reference, max |err|={err}"
    print("KERNEL_OK")
</pallas_src>

<mosaic_0001>
module attributes {stable_mosaic.version = 11 : i64} {
  func.func @sohcnn_kernel(%arg0: memref<14x20xf32, #tpu.memory_space<vmem>>, %arg1: memref<20x32xf32, #tpu.memory_space<vmem>>, %arg2: memref<1x32xf32, #tpu.memory_space<vmem>>, %arg3: memref<3x32x32xf32, #tpu.memory_space<vmem>>, %arg4: memref<1x32xf32, #tpu.memory_space<vmem>>, %arg5: memref<32x16xf32, #tpu.memory_space<vmem>>, %arg6: memref<1x16xf32, #tpu.memory_space<vmem>>, %arg7: memref<16x128xf32, #tpu.memory_space<vmem>>, %arg8: memref<1x128xf32, #tpu.memory_space<vmem>>, %arg9: memref<2x128xf32, #tpu.memory_space<vmem>>) attributes {dimension_semantics = [], scalar_prefetch = 0 : i64, scratch_operands = 0 : i64, tpu.core_type = #tpu.core_type<tc>} {
    %c0 = arith.constant 0 : index
    %c0_0 = arith.constant 0 : index
    %0 = vector.load %arg0[%c0, %c0_0] : memref<14x20xf32, #tpu.memory_space<vmem>>, vector<14x20xf32>
    %c0_1 = arith.constant 0 : index
    %c0_2 = arith.constant 0 : index
    %1 = vector.load %arg1[%c0_1, %c0_2] : memref<20x32xf32, #tpu.memory_space<vmem>>, vector<20x32xf32>
    %c0_3 = arith.constant 0 : index
    %c0_4 = arith.constant 0 : index
    %2 = vector.load %arg2[%c0_3, %c0_4] : memref<1x32xf32, #tpu.memory_space<vmem>>, vector<1x32xf32>
    %c0_5 = arith.constant 0 : index
    %c0_6 = arith.constant 0 : index
    %c0_7 = arith.constant 0 : index
    %3 = vector.load %arg3[%c0_5, %c0_6, %c0_7] : memref<3x32x32xf32, #tpu.memory_space<vmem>>, vector<1x32x32xf32>
    %4 = vector.shape_cast %3 : vector<1x32x32xf32> to vector<32x32xf32>
    %c1 = arith.constant 1 : index
    %c0_8 = arith.constant 0 : index
    %c0_9 = arith.constant 0 : index
    %5 = vector.load %arg3[%c1, %c0_8, %c0_9] : memref<3x32x32xf32, #tpu.memory_space<vmem>>, vector<1x32x32xf32>
    %6 = vector.shape_cast %5 : vector<1x32x32xf32> to vector<32x32xf32>
    %c2 = arith.constant 2 : index
    %c0_10 = arith.constant 0 : index
    %c0_11 = arith.constant 0 : index
    %7 = vector.load %arg3[%c2, %c0_10, %c0_11] : memref<3x32x32xf32, #tpu.memory_space<vmem>>, vector<1x32x32xf32>
    %8 = vector.shape_cast %7 : vector<1x32x32xf32> to vector<32x32xf32>
    %c0_12 = arith.constant 0 : index
    %c0_13 = arith.constant 0 : index
    %9 = vector.load %arg4[%c0_12, %c0_13] : memref<1x32xf32, #tpu.memory_space<vmem>>, vector<1x32xf32>
    %c0_14 = arith.constant 0 : index
    %c0_15 = arith.constant 0 : index
    %10 = vector.load %arg5[%c0_14, %c0_15] : memref<32x16xf32, #tpu.memory_space<vmem>>, vector<32x16xf32>
    %c0_16 = arith.constant 0 : index
    %c0_17 = arith.constant 0 : index
    %11 = vector.load %arg6[%c0_16, %c0_17] : memref<1x16xf32, #tpu.memory_space<vmem>>, vector<1x16xf32>
    %c0_18 = arith.constant 0 : index
    %c0_19 = arith.constant 0 : index
    %12 = vector.load %arg7[%c0_18, %c0_19] : memref<16x128xf32, #tpu.memory_space<vmem>>, vector<16x128xf32>
    %c0_20 = arith.constant 0 : index
    %c0_21 = arith.constant 0 : index
    %13 = vector.load %arg8[%c0_20, %c0_21] : memref<1x128xf32, #tpu.memory_space<vmem>>, vector<1x128xf32>
    %cst = arith.constant dense<0.000000e+00> : vector<14x32xf32>
    %14 = tpu.matmul %0, %1, %cst {dimension_numbers = #tpu.dot_dimension_numbers<[1], [0], [0], [1], [0, 0, 1, 1], [], []>} : vector<14x20xf32>, vector<20x32xf32>, vector<14x32xf32> -> vector<14x32xf32>
    %15 = vector.broadcast %2 : vector<1x32xf32> to vector<14x32xf32>
    %16 = arith.addf %14, %15 : vector<14x32xf32>
    %cst_22 = arith.constant 0.000000e+00 : f32
    %17 = vector.broadcast %cst_22 : f32 to vector<14x32xf32>
    %18 = arith.maximumf %16, %17 : vector<14x32xf32>
    %19 = vector.extract_strided_slice %18 {offsets = [0, 0], sizes = [5, 32], strides = [1, 1]} : vector<14x32xf32> to vector<5x32xf32>
    %cst_23 = arith.constant dense<0.000000e+00> : vector<5x32xf32>
    %20 = tpu.matmul %19, %4, %cst_23 {dimension_numbers = #tpu.dot_dimension_numbers<[1], [0], [0], [1], [0, 0, 1, 1], [], []>} : vector<5x32xf32>, vector<32x32xf32>, vector<5x32xf32> -> vector<5x32xf32>
    %21 = vector.extract_strided_slice %18 {offsets = [1, 0], sizes = [5, 32], strides = [1, 1]} : vector<14x32xf32> to vector<5x32xf32>
    %cst_24 = arith.constant dense<0.000000e+00> : vector<5x32xf32>
    %22 = tpu.matmul %21, %6, %cst_24 {dimension_numbers = #tpu.dot_dimension_numbers<[1], [0], [0], [1], [0, 0, 1, 1], [], []>} : vector<5x32xf32>, vector<32x32xf32>, vector<5x32xf32> -> vector<5x32xf32>
    %23 = arith.addf %20, %22 : vector<5x32xf32>
    %24 = vector.extract_strided_slice %18 {offsets = [2, 0], sizes = [5, 32], strides = [1, 1]} : vector<14x32xf32> to vector<5x32xf32>
    %cst_25 = arith.constant dense<0.000000e+00> : vector<5x32xf32>
    %25 = tpu.matmul %24, %8, %cst_25 {dimension_numbers = #tpu.dot_dimension_numbers<[1], [0], [0], [1], [0, 0, 1, 1], [], []>} : vector<5x32xf32>, vector<32x32xf32>, vector<5x32xf32> -> vector<5x32xf32>
    %26 = arith.addf %23, %25 : vector<5x32xf32>
    %27 = vector.extract_strided_slice %26 {offsets = [0, 0], sizes = [1, 32], strides = [1, 1]} : vector<5x32xf32> to vector<1x32xf32>
    %28 = arith.addf %27, %9 : vector<1x32xf32>
    %cst_26 = arith.constant 0.000000e+00 : f32
    %29 = vector.broadcast %cst_26 : f32 to vector<1x32xf32>
    %30 = arith.maximumf %28, %29 : vector<1x32xf32>
    %31 = vector.extract_strided_slice %26 {offsets = [2, 0], sizes = [1, 32], strides = [1, 1]} : vector<5x32xf32> to vector<1x32xf32>
    %32 = arith.addf %31, %9 : vector<1x32xf32>
    %cst_27 = arith.constant 0.000000e+00 : f32
    %33 = vector.broadcast %cst_27 : f32 to vector<1x32xf32>
    %34 = arith.maximumf %32, %33 : vector<1x32xf32>
    %35 = arith.addf %30, %34 : vector<1x32xf32>
    %36 = vector.extract_strided_slice %26 {offsets = [4, 0], sizes = [1, 32], strides = [1, 1]} : vector<5x32xf32> to vector<1x32xf32>
    %37 = arith.addf %36, %9 : vector<1x32xf32>
    %cst_28 = arith.constant 0.000000e+00 : f32
    %38 = vector.broadcast %cst_28 : f32 to vector<1x32xf32>
    %39 = arith.maximumf %37, %38 : vector<1x32xf32>
    %40 = arith.addf %35, %39 : vector<1x32xf32>
    %cst_29 = arith.constant 0.333333343 : f32
    %41 = vector.broadcast %cst_29 : f32 to vector<1x32xf32>
    %42 = arith.mulf %40, %41 : vector<1x32xf32>
    %43 = vector.extract_strided_slice %18 {offsets = [7, 0], sizes = [5, 32], strides = [1, 1]} : vector<14x32xf32> to vector<5x32xf32>
    %cst_30 = arith.constant dense<0.000000e+00> : vector<5x32xf32>
    %44 = tpu.matmul %43, %4, %cst_30 {dimension_numbers = #tpu.dot_dimension_numbers<[1], [0], [0], [1], [0, 0, 1, 1], [], []>} : vector<5x32xf32>, vector<32x32xf32>, vector<5x32xf32> -> vector<5x32xf32>
    %45 = vector.extract_strided_slice %18 {offsets = [8, 0], sizes = [5, 32], strides = [1, 1]} : vector<14x32xf32> to vector<5x32xf32>
    %cst_31 = arith.constant dense<0.000000e+00> : vector<5x32xf32>
    %46 = tpu.matmul %45, %6, %cst_31 {dimension_numbers = #tpu.dot_dimension_numbers<[1], [0], [0], [1], [0, 0, 1, 1], [], []>} : vector<5x32xf32>, vector<32x32xf32>, vector<5x32xf32> -> vector<5x32xf32>
    %47 = arith.addf %44, %46 : vector<5x32xf32>
    %48 = vector.extract_strided_slice %18 {offsets = [9, 0], sizes = [5, 32], strides = [1, 1]} : vector<14x32xf32> to vector<5x32xf32>
    %cst_32 = arith.constant dense<0.000000e+00> : vector<5x32xf32>
    %49 = tpu.matmul %48, %8, %cst_32 {dimension_numbers = #tpu.dot_dimension_numbers<[1], [0], [0], [1], [0, 0, 1, 1], [], []>} : vector<5x32xf32>, vector<32x32xf32>, vector<5x32xf32> -> vector<5x32xf32>
    %50 = arith.addf %47, %49 : vector<5x32xf32>
    %51 = vector.extract_strided_slice %50 {offsets = [0, 0], sizes = [1, 32], strides = [1, 1]} : vector<5x32xf32> to vector<1x32xf32>
    %52 = arith.addf %51, %9 : vector<1x32xf32>
    %cst_33 = arith.constant 0.000000e+00 : f32
    %53 = vector.broadcast %cst_33 : f32 to vector<1x32xf32>
    %54 = arith.maximumf %52, %53 : vector<1x32xf32>
    %55 = vector.extract_strided_slice %50 {offsets = [2, 0], sizes = [1, 32], strides = [1, 1]} : vector<5x32xf32> to vector<1x32xf32>
    %56 = arith.addf %55, %9 : vector<1x32xf32>
    %cst_34 = arith.constant 0.000000e+00 : f32
    %57 = vector.broadcast %cst_34 : f32 to vector<1x32xf32>
    %58 = arith.maximumf %56, %57 : vector<1x32xf32>
    %59 = arith.addf %54, %58 : vector<1x32xf32>
    %60 = vector.extract_strided_slice %50 {offsets = [4, 0], sizes = [1, 32], strides = [1, 1]} : vector<5x32xf32> to vector<1x32xf32>
    %61 = arith.addf %60, %9 : vector<1x32xf32>
    %cst_35 = arith.constant 0.000000e+00 : f32
    %62 = vector.broadcast %cst_35 : f32 to vector<1x32xf32>
    %63 = arith.maximumf %61, %62 : vector<1x32xf32>
    %64 = arith.addf %59, %63 : vector<1x32xf32>
    %cst_36 = arith.constant 0.333333343 : f32
    %65 = vector.broadcast %cst_36 : f32 to vector<1x32xf32>
    %66 = arith.mulf %64, %65 : vector<1x32xf32>
    %67 = tpu.concatenate %42, %66 in 0 : vector<1x32xf32>, vector<1x32xf32> -> vector<2x32xf32>
    %cst_37 = arith.constant dense<0.000000e+00> : vector<2x16xf32>
    %68 = tpu.matmul %67, %10, %cst_37 {dimension_numbers = #tpu.dot_dimension_numbers<[1], [0], [0], [1], [0, 0, 1, 1], [], []>} : vector<2x32xf32>, vector<32x16xf32>, vector<2x16xf32> -> vector<2x16xf32>
    %69 = vector.broadcast %11 : vector<1x16xf32> to vector<2x16xf32>
    %70 = arith.addf %68, %69 : vector<2x16xf32>
    %cst_38 = arith.constant 0.000000e+00 : f32
    %71 = vector.broadcast %cst_38 : f32 to vector<2x16xf32>
    %72 = arith.maximumf %70, %71 : vector<2x16xf32>
    %cst_39 = arith.constant dense<0.000000e+00> : vector<2x128xf32>
    %73 = tpu.matmul %72, %12, %cst_39 {dimension_numbers = #tpu.dot_dimension_numbers<[1], [0], [0], [1], [0, 0, 1, 1], [], []>} : vector<2x16xf32>, vector<16x128xf32>, vector<2x128xf32> -> vector<2x128xf32>
    %74 = vector.broadcast %13 : vector<1x128xf32> to vector<2x128xf32>
    %75 = arith.addf %73, %74 : vector<2x128xf32>
    %c0_40 = arith.constant 0 : index
    %c0_41 = arith.constant 0 : index
    %76 = vector.load %arg9[%c0_40, %c0_41] : memref<2x128xf32, #tpu.memory_space<vmem>>, vector<2x128xf32>
    tpu.vector_store %arg9[%c0_40, %c0_41], %75 {strides = array<i32>} : memref<2x128xf32, #tpu.memory_space<vmem>>, vector<2x128xf32>,
    return
  }
}

</mosaic_0001>

<bundles_post_ra>
// kernel: sohcnn_forward.1
= control target key start
LH: loop header
LB: loop body
LE: loop exit
PB: predicated region body
PF: predicated region fallthrough
CT: control target
= control target key end

     0   :  { %vm75_vm0 = vcmask 1043456   ;;  %vm68_vm1 = vcmask 162816   ;;  %s1200_s0 = inlined_call_operand.vmem [shape: f32[14,20], index: 0, kind: input, shape index: {}]   ;;  %s1201_s1 = inlined_call_operand.vmem [shape: f32[20,32], index: 1, kind: input, shape index: {}]   ;;  %s1202_s2 = inlined_call_operand.vmem [shape: f32[1,32], index: 2, kind: input, shape index: {}]   ;;  %s1203_s3 = inlined_call_operand.vmem [shape: f32[3,32,32], index: 3, kind: input, shape index: {}]   ;;  %s1204_s4 = inlined_call_operand.vmem [shape: f32[1,32], index: 4, kind: input, shape index: {}]   ;;  %s1205_s5 = inlined_call_operand.vmem [shape: f32[32,16], index: 5, kind: input, shape index: {}]   ;;  %s1206_s6 = inlined_call_operand.vmem [shape: f32[1,16], index: 6, kind: input, shape index: {}]   ;;  %s1207_s7 = inlined_call_operand.vmem [shape: f32[16,128], index: 7, kind: input, shape index: {}]   ;;  %s1208_s8 = inlined_call_operand.vmem [shape: f32[1,128], index: 8, kind: input, shape index: {}]   ;;  %s1209_s9 = inlined_call_operand.hbm [shape: f32[2,128], index: 9, kind: output, shape index: {}]  }
   0x1   :  { %v37_v0 = vld [vmem:[%s1201_s1 + $0x10] sm:$0xf]  ;;  %v36_v1 = vld [vmem:[%s1201_s1 + $0x8] sm:$0xff]  ;;  %v33_v2 = vld [vmem:[%s1200_s0] sm:$0xff] }
   0x2   :  { %874 = vmatprep.subr.msk.mxu0 %vm75_vm0, %v37_v0  ;;  %v35_v3 = vld [vmem:[%s1201_s1] sm:$0xff]  ;;  %880 = vmatprep.mubr.msk.f32.mxu0 %vm68_vm1, %v33_v2 }
   0x3   :  { %875 = vmatpush3.msk.msra.mxu0 %vm75_vm0, %v37_v0 }
   0x4   :  { %14 = vsyncpa [#allocation3], 0  ;;  %876 = vmatprep.subr.mxu0 %v36_v1  ;;  %v992_v4 = vmov 0.0   ;;  %v34_v5 = vld [vmem:[%s1200_s0 + $0x8] sm:$0x3f]  ;;  %v1064_v6 = vld [vmem:[%s1203_s3 + $0x18] sm:$0xff]  ;;  %v380_v36 = vlaneseq }
   0x5   :  { %883 = vmatprep.subr.mxu1 %v992_v4  ;;  %877 = vmatpush3.msra.mxu0 %v36_v1  ;;  %v812_v7 = vld [vmem:[%s1203_s3 + $0x38] sm:$0xff]  ;;  %v1075_v8 = vld [vmem:[%s1203_s3 + $0x10] sm:$0xff]  ;;  %v1086_v10 = vld [vmem:[%s1203_s3 + $0x8] sm:$0xff]  ;;  %vm993_vm2 = vmmov 0   ;;  %vm158_vm3 = vcmask 261120   ;;  %vm468_vm4 = vcmask 1040384  }
   0x6   :  { %878 = vmatprep.subr.mxu0 %v35_v3  ;;  %884 = vmatpush3.msra.mxu1 %v812_v7  ;;  %v811_v9 = vld [vmem:[%s1203_s3 + $0x30] sm:$0xff]  ;;  %v810_v11 = vld [vmem:[%s1203_s3 + $0x28] sm:$0xff]  ;;  %v1097_v12 = vld [vmem:[%s1203_s3] sm:$0xff]  ;;  %v381_v40 = vshrl.u32 %v380_v36, 7  ;;  %vm720_vm5 = vcmask 130048   ;;  %s994_s13 = smov [#allocation2]  }
   0x7   :  { %879 = vmatpush3.msra.mxu0 %v35_v3  ;;  %885 = vmatprep.subr.mxu1 %v992_v4  ;;  %v809_v13 = vld [vmem:[%s1203_s3 + $0x20] sm:$0xff]  ;;  %v816_v20 = vld [vmem:[%s1203_s3 + $0x58] sm:$0xff]  ;;  %v815_v22 = vld [vmem:[%s1203_s3 + $0x50] sm:$0xff]  ;;  %s801_s14 = sshll.u32 %s994_s13, 4  ;;  %s802_s14 = int_to_ptr.vmem [resolvable:$true] %s801_s14 }
   0x8   :  { %881 = vmatmul.mubr.msk.f32.vlgmr.msra.gmra.mxu0 %vm68_vm1, %v34_v5  ;;  %894 = vmatprep.subr.mxu0 %v992_v4  ;;  %v817_v15 = vld [vmem:[%s1202_s2] ss:$0 sm:$0xff]  ;;  %v814_v23 = vld [vmem:[%s1203_s3 + $0x48] sm:$0xff]  ;;  %v57_v31 = vld [vmem:[%s1205_s5 + $0x18] sm:$0xff]  ;;  %v382_v42 = vsub.s32 0, %v381_v40  ;;  %p975_p1 = scmp.lt.s32.totalorder %s802_s14, %s802_s14 }
   0x9   :  { %895 = vmatpush3.msra.mxu0 %v1064_v6  ;;  %886 = vmatpush3.msra.mxu1 %v811_v9  ;;  %v813_v25 = vld [vmem:[%s1203_s3 + $0x40] sm:$0xff]  ;;  %v56_v32 = vld [vmem:[%s1205_s5 + $0x10] sm:$0xff]  ;;  %v55_v33 = vld [vmem:[%s1205_s5 + $0x8] sm:$0xff] }
   0xa   :  { %896 = vmatprep.subr.mxu0 %v992_v4  ;;  %887 = vmatprep.subr.mxu1 %v992_v4  ;;  %v54_v34 = vld [vmem:[%s1205_s5] sm:$0xff] }
   0xb   :  { %897 = vmatpush3.msra.mxu0 %v1075_v8  ;;  %888 = vmatpush3.msra.mxu1 %v810_v11  ;;  %v53_v43 = vld [vmem:[%s1204_s4] sm:$0x1] }
   0xc   :  { %898 = vmatprep.subr.mxu0 %v992_v4  ;;  %889 = vmatprep.subr.mxu1 %v992_v4  ;;  %v383_v48 = vrot.slane %v53_v43, %v382_v42 }
   0xd   :  { %899 = vmatpush3.msra.mxu0 %v1086_v10  ;;  %902 = vmatprep.mubr.msk.f32.mxu0 %vm993_vm2, %v992_v4 }
   0xe   :  { %900 = vmatprep.subr.mxu0 %v992_v4  ;;  %890 = vmatpush3.msra.mxu1 %v809_v13 }
   0xf   :  { %901 = vmatpush3.msra.mxu0 %v1097_v12  ;;  %891 = vmatprep.mubr.msk.f32.mxu1 %vm993_vm2, %v992_v4 }
  0x10   :  { %916 = vmatprep.subr.mxu0 %v992_v4  ;;  %905 = vmatprep.subr.mxu1 %v992_v4 }
  0xc8   :  { %v882_v14 = vpop.f32.mrf.mxu0 }
  0xc9   :  { %v151_v21 = vadd.f32 %v882_v14, %v817_v15  ;;  %v59_v14 = vld [vmem:[%s1207_s7] sm:$0xff] }
  0xca   :  { %v145_v16 = vpop.f32.mrf.mxu0 }
  0xcb   :  { %v146_v17 = vadd.f32 %v817_v15, %v145_v16  ;;  %v155_v24 = vmax.f32 %v151_v21, 0.0  ;;  %v827_v15 = vld [vmem:[%s1206_s6] ss:$0 sm:$0xff] }
  0xcd   :  { %v154_v18 = vmax.f32 %v146_v17, 0.0  ;;  %v544_v28 = vrot.slane %v155_v24, 1  ;;  %v470_v29 = vrot.slane %v155_v24, 7 }
  0xcf   :  { %903 = vmatmul.mubr.msk.f32.vlgmr.msra.gmra.mxu0 %vm158_vm3, %v154_v18  ;;  %v157_v19 = vrot.slane %v154_v18, 1  ;;  %v303_v26 = vrot.slane %v154_v18, 2  ;;  %v469_v27 = vrot.slane %v154_v18, 7 }
  0xd0   :  { %917 = vmatpush3.msra.mxu0 %v812_v7  ;;  %924 = vmatprep.mubr.msk.f32.mxu0 %vm993_vm2, %v992_v4 }
  0xd1   :  { %918 = vmatprep.subr.mxu0 %v992_v4  ;;  %892 = vmatmul.mubr.msk.f32.vlgmr.msra.gmra.mxu1 %vm158_vm3, %v157_v19  ;;  %v471_v30 = vsel %vm468_vm4, %v469_v27, %v470_v29 }
  0xd2   :  { %906 = vmatpush3.msra.mxu1 %v816_v20  ;;  %919 = vmatpush3.msra.mxu0 %v811_v9 }
  0xd3   :  { %907 = vmatprep.subr.mxu1 %v992_v4  ;;  %920 = vmatprep.subr.mxu0 %v992_v4 }
  0xd4   :  { %908 = vmatpush3.msra.mxu1 %v815_v22  ;;  %921 = vmatpush3.msra.mxu0 %v810_v11 }
  0xd5   :  { %909 = vmatprep.subr.mxu1 %v992_v4  ;;  %922 = vmatprep.subr.mxu0 %v992_v4 }
  0xd6   :  { %910 = vmatpush3.msra.mxu1 %v814_v23  ;;  %923 = vmatpush3.msra.mxu0 %v809_v13  ;;  %v60_v13 = vld [vmem:[%s1207_s7 + $0x8] sm:$0xff]  ;;  %s970_s7 = scalar_lea.vmem %s802_s14, 32 }
  0xd7   :  { %911 = vmatprep.subr.mxu1 %v992_v4  ;;  %925 = vmatmul.mubr.msk.f32.vlgmr.msra.gmra.mxu0 %vm158_vm3, %v155_v24  ;;  %p971_p0 = scmp.ne.s32.totalorder %s802_s14, %s970_s7  ;;  %p976_p2 = scmp.lt.s32.totalorder %s970_s7, %s970_s7 }
  0xd8   :  { %938 = vmatprep.subr.mxu0 %v992_v4  ;;  %912 = vmatpush3.msra.mxu1 %v813_v25 }
  0xd9   :  { %913 = vmatprep.mubr.msk.f32.mxu1 %vm993_vm2, %v992_v4  ;;  %939 = vmatpush3.msra.mxu0 %v816_v20  ;;  %v829_v20 = vld [vmem:[%s1208_s8] ss:$0 sm:$0xff]  ;;  %p977_p3 = por %p976_p2, %p975_p1 }
  0xda   :  { %914 = vmatmul.mubr.msk.f32.vlgmr.msra.gmra.mxu1 %vm158_vm3, %v303_v26  ;;  %927 = vmatprep.subr.mxu1 %v992_v4 }
  0xdb   :  { %940 = vmatprep.subr.mxu0 %v992_v4  ;;  %928 = vmatpush3.msra.mxu1 %v1064_v6  ;;  %p978_p4 = pnand %p977_p3, %p971_p0 }
  0xdc   :  { %941 = vmatpush3.msra.mxu0 %v815_v22  ;;  %929 = vmatprep.subr.mxu1 %v992_v4 }
  0xdd   :  { %942 = vmatprep.subr.mxu0 %v992_v4  ;;  %930 = vmatpush3.msra.mxu1 %v1075_v8 }
  0xde   :  { %943 = vmatpush3.msra.mxu0 %v814_v23  ;;  %931 = vmatprep.subr.mxu1 %v992_v4 }
  0xdf   :  { %944 = vmatprep.subr.mxu0 %v992_v4  ;;  %932 = vmatpush3.msra.mxu1 %v1086_v10 }
  0xe0   :  { %945 = vmatpush3.msra.mxu0 %v813_v25  ;;  %946 = vmatprep.mubr.msk.f32.mxu0 %vm993_vm2, %v992_v4 }
  0xe1   :  { %933 = vmatprep.subr.mxu1 %v992_v4  ;;  %947 = vmatmul.mubr.msk.f32.vlgmr.msra.gmra.mxu0 %vm158_vm3, %v544_v28 }
  0xe2   :  { %934 = vmatpush3.msra.mxu1 %v1097_v12  ;;  %935 = vmatprep.mubr.msk.f32.mxu1 %vm993_vm2, %v992_v4 }
  0xe3   :  { %936 = vmatmul.mubr.msk.f32.vlgmr.msra.gmra.mxu1 %vm158_vm3, %v471_v30  ;;  %949 = vmatprep.subr.mxu1 %v992_v4 }
  0xe4   :  { %957 = vmatprep.mubr.msk.f32.mxu1 %vm993_vm2, %v992_v4  ;;  %960 = vmatprep.subr.mxu0 %v992_v4 }
  0xe5   :  { %964 = vmatprep.mubr.msk.f32.mxu0 %vm993_vm2, %v992_v4  ;;  %950 = vmatpush3.msra.mxu1 %v57_v31 }
  0xe6   :  { %951 = vmatprep.subr.mxu1 %v992_v4  ;;  %961 = vmatpush3.msra.mxu0 %v60_v13 }
  0xe7   :  { %952 = vmatpush3.msra.mxu1 %v56_v32  ;;  %962 = vmatprep.subr.mxu0 %v992_v4 }
  0xe8   :  { %953 = vmatprep.subr.mxu1 %v992_v4  ;;  %963 = vmatpush3.msra.mxu0 %v59_v14 }
  0xe9   :  { %954 = vmatpush3.msra.mxu1 %v55_v33 }
  0xea   :  { %955 = vmatprep.subr.mxu1 %v992_v4 }
  0xeb   :  { %956 = vmatpush3.msra.mxu1 %v54_v34 }
 0x18f   :  { %v299_v35 = vpop.f32.mrf.mxu0 }
 0x191   :  { %v227_v37 = vpop.f32.mrf.mxu1  ;;  %v904_v38 = vpop.f32.mrf.mxu0 }
 0x192   :  { %v300_v45 = vadd.f32 %v299_v35, %v227_v37 }
 0x193   :  { %v893_v39 = vpop.f32.mrf.mxu1 }
 0x197   :  { %v464_v41 = vpop.f32.mrf.mxu0 }
 0x199   :  { %v926_v44 = vpop.f32.mrf.mxu0 }
 0x19a   :  { %v372_v46 = vpop.f32.mrf.mxu1 }
 0x19b   :  { %v376_v47 = vadd.f32 %v372_v46, %v300_v45 }
 0x19c   :  { %v915_v49 = vpop.f32.mrf.mxu1 }
 0x19d   :  { %v385_v50 = vadd.f32 %v383_v48, %v376_v47  ;;  %v377_v57 = vadd.f32 %v376_v47, %v53_v43 }
 0x19f   :  { %v386_v54 = vmax.f32 %v385_v50, 0.0  ;;  %v378_v62 = vmax.f32 %v377_v57, 0.0 }
 0x1a1   :  { %v613_v51 = vpop.f32.mrf.mxu0  ;;  %v388_v59 = vrot.slane %v386_v54, 2  ;;  %v391_v3 = vrot.slane %v386_v54, 4 }
 0x1a3   :  { %v540_v52 = vpop.f32.mrf.mxu1  ;;  %v948_v53 = vpop.f32.mrf.mxu0  ;;  %v390_v0 = vadd.f32 %v388_v59, %v378_v62 }
 0x1a4   :  { %v541_v55 = vadd.f32 %v540_v52, %v464_v41 }
 0x1a5   :  { %v937_v56 = vpop.f32.mrf.mxu1  ;;  %v393_v7 = vadd.f32 %v391_v3, %v390_v0 }
 0x1a6   :  { %v617_v58 = vadd.f32 %v613_v51, %v541_v55 }
 0x1a7   :  { %v394_v10 = vmul.f32 0.33333334, %v393_v7 }
 0x1a8   :  { %v618_v60 = vadd.f32 %v617_v58, %v53_v43  ;;  %v620_v61 = vadd.f32 %v617_v58, %v383_v48 }
 0x1aa   :  { %v621_v63 = vmax.f32 %v620_v61, 0.0  ;;  %v619_v1 = vmax.f32 %v618_v60, 0.0 }
 0x1ac   :  { %v623_v2 = vrot.slane %v621_v63, 2  ;;  %v626_v6 = vrot.slane %v621_v63, 4 }
 0x1ae   :  { %v625_v5 = vadd.f32 %v623_v2, %v619_v1 }
 0x1b0   :  { %v628_v8 = vadd.f32 %v626_v6, %v625_v5 }
 0x1b2   :  { %v629_v9 = vmul.f32 0.33333334, %v628_v8 }
 0x1b4   :  { %v631_v11 = vrot.slane %v629_v9, 7 }
 0x1b6   :  { %v633_v12 = vsel %vm468_vm4, %v394_v10, %v631_v11 }
 0x1b7   :  { %958 = vmatmul.mubr.msk.f32.vlgmr.msra.gmra.mxu1 %vm158_vm3, %v633_v12 }
 0x277   :  { %v709_v16 = vpop.f32.mrf.mxu1 }
 0x278   :  { %v710_v17 = vadd.f32 %v827_v15, %v709_v16 }
 0x279   :  { %v959_v18 = vpop.f32.mrf.mxu1 }
 0x27a   :  { %v713_v19 = vmax.f32 %v710_v17, 0.0 }
 0x27c   :  { %965 = vmatmul.mubr.msk.f32.vlgmr.msra.gmra.mxu0 %vm720_vm5, %v713_v19 }
 0x33c   :  { %v790_v4 = vpop.f32.mrf.mxu0 }
 0x33d   :  { %v791_v21 = vadd.f32 %v829_v20, %v790_v4 }
 0x33e   :  { %v966_v22 = vpop.f32.mrf.mxu0 }
 0x33f   :  { %794 = vst [vmem:[#allocation2] sm:$0x3] %v791_v21 }
 0x340   :  { %981 = shalt.err (!%p978_p4)
}
 0x341   :  { %804 = dma.vmem_to_hbm [thread:$0]  %s802_s14, 32, %s1209_s9, [#allocation3]  }
 0x342   :  { %990 = dma.done.wait [#allocation3], 32  }
 0x343   :  { %991 = vsyncadd [#allocation3], 4294967264 }
 0x344   :  { %808 = vsyncpa [#allocation3], 1 }

</bundles_post_ra>
